<compile_context>
chip_gen: v6e
topology: v6e:2x2x1
jax: 0.10.0
libtpu: 0.0.40
codegen_flags: <defaults>
</compile_context>

<pallas_src>
import jax
import jax.numpy as jnp
from jax.experimental import pallas as pl
from jax.experimental.pallas import tpu as pltpu


def _round_up(x, m):
    return ((x + m - 1) // m) * m


# ---------------------------------------------------------------------------
# 'Linear' method:  out[i] = sum_l x[i, l] * w[l] + b        (VPU mat-vec)
# ---------------------------------------------------------------------------
def _linear_kernel(x_ref, w_ref, b_ref, o_ref):
    x = x_ref[...].astype(jnp.float32)        # (TM, L)  cast in-tile
    w = w_ref[...].astype(jnp.float32)        # (1, L)   broadcast row
    b = b_ref[0, 0]                           # scalar from SMEM
    # VPU mul + lane reduce; the (TM,) -> (1, TM) relayout is XLU work that is
    # hidden under the HBM bound for small L.
    # TODO(synk): for large L add a reduction grid axis with a (1, TM) f32
    # scratch accumulator (init at k==0, bias+store at k==last, axis "arbitrary").
    row = jnp.sum(x * w, axis=1) + b          # (TM,)
    o_ref[...] = row[None, :]                 # (1, TM)  lane-dense store


def _pick_linear_tm(B, L, vmem_budget=12 << 20):
    """Largest batch tile whose double-buffered (TM, L) f32 input fits the
    budget; multiple of 128 (lane-dense output); >= 2 grid steps when B allows
    (megacore on v7x); single full block for small B."""
    if B <= 128:
        return B
    cap = max(128, ((vmem_budget // (2 * L * 4)) // 128) * 128)
    tm = min(1024, cap)
    tm = min(tm, max(128, _round_up((B + 1) // 2, 128)))
    return tm


def sample_weight_linear(x, weight, bias, tm=None):
    """x: (B, L), weight: (1, L) (PyTorch nn.Linear layout), bias: (1,).
    Returns (B, 1) float32, same as nn.Linear(L, 1)(x)."""
    B, L = x.shape
    if tm is None:
        tm = _pick_linear_tm(B, L)
    grid = pl.cdiv(B, tm)
    Bp = grid * tm                            # padded OUTPUT slab only (no jnp.pad of x)

    w_row = weight.reshape(1, L)              # native dtype (no HBM upcast pass)
    b2 = bias.reshape(1, 1).astype(jnp.float32)

    out = pl.pallas_call(
        _linear_kernel,
        out_shape=jax.ShapeDtypeStruct((1, Bp), jnp.float32),
        grid=(grid,),
        in_specs=[
            pl.BlockSpec((tm, L), lambda i: (i, 0)),                 # batch tile (last tile clipped)
            pl.BlockSpec((1, L), lambda i: (0, 0)),                  # weight row (reused)
            pl.BlockSpec((1, 1), lambda i: (0, 0),
                         memory_space=pltpu.MemorySpace.SMEM),       # bias scalar
        ],
        out_specs=pl.BlockSpec((1, tm), lambda i: (0, i)),           # lane-dense output
        compiler_params=pltpu.CompilerParams(
            dimension_semantics=("parallel",),                       # megacore on v7x
            vmem_limit_bytes=32 * 1024 * 1024),                      # v5e default is 16 MiB
    )(x, w_row, b2)

    return out[0, :B].reshape(B, 1)           # back to PyTorch (B, 1)


# ---------------------------------------------------------------------------
# 'Parameter' method:  s = softmax(P, axis=0);  out[k] = s[idx[k], idx[k]]
#
# Kernel computes only the diagonal of the column-softmax, tiled over columns:
#   diag_sm[j] = exp(P[j, j] - max_i P[i, j]) / sum_i exp(P[i, j] - max_i P[i, j])
# ---------------------------------------------------------------------------
def _param_diag_softmax_kernel(p_ref, o_ref):
    n, tn = p_ref.shape                                     # (N, TN) column block
    c0 = pl.program_id(0) * tn                              # global column offset

    p = p_ref[...].astype(jnp.float32)                      # (N, TN)
    col_max = jnp.max(p, axis=0, keepdims=True)             # (1, TN)
    e = jnp.exp(p - col_max)                                # single EUP pass
    col_sum = jnp.sum(e, axis=0, keepdims=True)             # (1, TN)

    # Diagonal: entry for local column j lives at global row c0 + j.  Masked
    # sublane reduce over the block — no second slab read, no second exp, and
    # safe on the partial last tile (columns past N match no row -> 0, which
    # the wrapper slices away).
    rows = jax.lax.broadcasted_iota(jnp.int32, (n, tn), 0)
    cols = jax.lax.broadcasted_iota(jnp.int32, (n, tn), 1)
    diag_e = jnp.sum(jnp.where(rows == cols + c0, e, 0.0),
                     axis=0, keepdims=True)                 # (1, TN)

    o_ref[...] = diag_e / col_sum                           # one rounding


def _pick_param_tn(N, vmem_budget=12 << 20):
    """Column tile: 128–512, double-buffered (N, TN) f32 under the budget,
    >= 2 grid steps when N allows; single full block for N < 128."""
    if N < 128:
        return N
    cap = max(128, ((vmem_budget // (2 * N * 4)) // 128) * 128)
    tn = min(512, cap)
    tn = min(tn, max(128, _round_up((N + 1) // 2, 128)))
    return tn


def sample_weight_parameter(p, index, tn=None):
    """p: (N, N), index: (K,) int.  Returns (K,) f32 == softmax(p, 0)[index, index]."""
    N = p.shape[0]
    if tn is None:
        tn = _pick_param_tn(N)
    grid = pl.cdiv(N, tn)
    Np = grid * tn
    # TODO(synk): for very large N (where an (N, TN) column slab no longer fits
    # v7x's 64 MiB VMEM) switch to a 2D row-tiled online-softmax variant with
    # (1, TN) running max/sum/diag scratch and contiguous row DMAs.

    diag_sm = pl.pallas_call(
        _param_diag_softmax_kernel,
        out_shape=jax.ShapeDtypeStruct((1, Np), jnp.float32),
        grid=(grid,),
        in_specs=[pl.BlockSpec((N, tn), lambda i: (0, i))],          # column tile
        out_specs=pl.BlockSpec((1, tn), lambda i: (0, i)),           # lane-dense diag
        compiler_params=pltpu.CompilerParams(
            dimension_semantics=("parallel",),
            vmem_limit_bytes=32 * 1024 * 1024),
    )(p)                                          # native dtype in, f32 out

    # K-element gather of the requested diagonal entries (tiny; done in XLA).
    return diag_sm[0, :N][index.astype(jnp.int32)]


# ---------------------------------------------------------------------------
# main
# ---------------------------------------------------------------------------
if __name__ == "__main__":
    key = jax.random.PRNGKey(0)
    k_x, k_w, k_b, k_p, k_x2, k_p2 = jax.random.split(key, 6)

    # ----- 'Linear' mode ---------------------------------------------------
    B, LATENT = 256, 32                          # grid of 2 batch tiles (TM=128)
    x = jax.random.normal(k_x, (B, LATENT), dtype=jnp.float32)
    bound = 1.0 / (LATENT ** 0.5)
    weight = jax.random.uniform(k_w, (1, LATENT), jnp.float32, -bound, bound)
    bias = jax.random.uniform(k_b, (1,), jnp.float32, -bound, bound)

    y_lin = jax.block_until_ready(sample_weight_linear(x, weight, bias))
    ref_lin = x @ weight.T + bias
    assert y_lin.shape == (B, 1)
    assert jnp.allclose(y_lin, ref_lin, atol=1e-5, rtol=1e-5)

    # Non-multiple batch: exercises the cdiv grid / clipped last tile (no pad).
    B2 = 200
    x2 = jax.random.normal(k_x2, (B2, LATENT), dtype=jnp.float32)
    y_lin2 = jax.block_until_ready(sample_weight_linear(x2, weight, bias))
    assert y_lin2.shape == (B2, 1)
    assert jnp.allclose(y_lin2, x2 @ weight.T + bias, atol=1e-5, rtol=1e-5)

    # ----- 'Parameter' mode ------------------------------------------------
    N, K = 256, 8                                # grid of 2 column tiles (TN=128)
    # __init__: torch.ones((N, N)) / N — plus a small deterministic perturbation
    # so the softmax is non-trivial.
    p_param = jnp.ones((N, N), jnp.float32) / N
    p_param = p_param + 0.01 * jax.random.normal(k_p, (N, N), dtype=jnp.float32)
    index = jnp.array([0, 3, 5, 7, 2, 9, 200, 131], dtype=jnp.int32)

    y_par = jax.block_until_ready(sample_weight_parameter(p_param, index))
    ref_par = jax.nn.softmax(p_param, axis=0)[index, index]
    assert y_par.shape == (K,)
    assert jnp.allclose(y_par, ref_par, atol=1e-5, rtol=1e-5)

    # Non-multiple N: exercises the cdiv grid + masked diag on the partial tile
    # (replaces the old tn=N full-matrix fallback).
    N2 = 200
    p2 = jnp.ones((N2, N2), jnp.float32) / N2
    p2 = p2 + 0.01 * jax.random.normal(k_p2, (N2, N2), dtype=jnp.float32)
    idx2 = jnp.array([0, 7, 63, 128, 150, 199], dtype=jnp.int32)
    y_par2 = jax.block_until_ready(sample_weight_parameter(p2, idx2))
    ref_par2 = jax.nn.softmax(p2, axis=0)[idx2, idx2]
    assert jnp.allclose(y_par2, ref_par2, atol=1e-5, rtol=1e-5)

    print("KERNEL_OK")
</pallas_src>

<mosaic_0001>
module attributes {stable_mosaic.version = 11 : i64} {
  func.func @_linear_kernel(%arg0: i32, %arg1: memref<128x32xf32, #tpu.memory_space<vmem>>, %arg2: memref<1x32xf32, #tpu.memory_space<vmem>>, %arg3: memref<1x1xf32, #tpu.memory_space<smem>>, %arg4: memref<1x128xf32, #tpu.memory_space<vmem>>) attributes {dimension_semantics = [#tpu.dimension_semantics<parallel>], iteration_bounds = array<i64: 2>, scalar_prefetch = 0 : i64, scratch_operands = 0 : i64, tpu.core_type = #tpu.core_type<tc>, window_params = [{transform_indices = @transform_0, window_bounds = array<i64: 128, 32>}, {pipeline_mode = #tpu.pipeline_mode<synchronous>, transform_indices = @transform_1, window_bounds = array<i64: 1, 32>}, {transform_indices = @transform_2, window_bounds = array<i64: 1, 1>}, {transform_indices = @transform_3, window_bounds = array<i64: 1, 128>}]} {
    %c0 = arith.constant 0 : index
    %c0_0 = arith.constant 0 : index
    %0 = vector.load %arg1[%c0, %c0_0] : memref<128x32xf32, #tpu.memory_space<vmem>>, vector<128x32xf32>
    %c0_1 = arith.constant 0 : index
    %c0_2 = arith.constant 0 : index
    %1 = vector.load %arg2[%c0_1, %c0_2] : memref<1x32xf32, #tpu.memory_space<vmem>>, vector<1x32xf32>
    %c0_3 = arith.constant 0 : index
    %c0_4 = arith.constant 0 : index
    %2 = memref.load %arg3[%c0_3, %c0_4] : memref<1x1xf32, #tpu.memory_space<smem>>
    %3 = vector.broadcast %1 : vector<1x32xf32> to vector<128x32xf32>
    %4 = arith.mulf %0, %3 : vector<128x32xf32>
    %cst = arith.constant dense<0.000000e+00> : vector<128xf32>
    %5 = vector.multi_reduction <add>, %4, %cst [1] : vector<128x32xf32> to vector<128xf32>
    %6 = vector.broadcast %2 : f32 to vector<128xf32>
    %7 = arith.addf %5, %6 : vector<128xf32>
    %8 = vector.shape_cast %7 : vector<128xf32> to vector<1x128xf32>
    %c0_5 = arith.constant 0 : index
    %c0_6 = arith.constant 0 : index
    %9 = vector.load %arg4[%c0_5, %c0_6] : memref<1x128xf32, #tpu.memory_space<vmem>>, vector<1x128xf32>
    tpu.vector_store %arg4[%c0_5, %c0_6], %8 {strides = array<i32>} : memref<1x128xf32, #tpu.memory_space<vmem>>, vector<1x128xf32>,
    return
  }
  func.func @transform_0(%arg0: i32) -> (i32, i32) {
    %c0_i32 = arith.constant 0 : i32
    %c0_i32_0 = arith.constant 0 : i32
    return %arg0, %c0_i32 : i32, i32
  }
  func.func @transform_1(%arg0: i32) -> (i32, i32) {
    %c0_i32 = arith.constant 0 : i32
    %c0_i32_0 = arith.constant 0 : i32
    %c0_i32_1 = arith.constant 0 : i32
    return %c0_i32, %c0_i32_0 : i32, i32
  }
  func.func @transform_2(%arg0: i32) -> (i32, i32) {
    %c0_i32 = arith.constant 0 : i32
    %c0_i32_0 = arith.constant 0 : i32
    %c0_i32_1 = arith.constant 0 : i32
    return %c0_i32, %c0_i32_0 : i32, i32
  }
  func.func @transform_3(%arg0: i32) -> (i32, i32) {
    %c0_i32 = arith.constant 0 : i32
    %c0_i32_0 = arith.constant 0 : i32
    return %c0_i32, %arg0 : i32, i32
  }
}

</mosaic_0001>

<bundles_post_ra>
// kernel: tpu_custom_call.1
= control target key start
LH: loop header
LB: loop body
LE: loop exit
PB: predicated region body
PF: predicated region fallthrough
CT: control target
= control target key end

     0   :  { %s792_s0 = inlined_call_operand.vmem [shape: f32[256,32], index: 0, kind: input, shape index: {}]   ;;  %s793_s1 = inlined_call_operand.vmem [shape: f32[1,32], index: 1, kind: input, shape index: {}]   ;;  %s794_s2 = inlined_call_operand.<no memory space> [shape: f32[1,1], index: 2, kind: input, shape index: {}]   ;;  %s795_s3 = inlined_call_operand.hbm [shape: f32[1,256], index: 3, kind: output, shape index: {}]  }
   0x1   :  { %8 = sst [smem:[#allocation2]] %s794_s2 }
   0x2   :  { %9 = vsyncpa [#allocation4], 0 }
   0x3   :  { %11 = vsyncpa [#allocation4 + $0x1], 0  ;;  %s609_s14 = smov 0   ;;  %s611_s15 = smov 0  }
   0x4   :  { %s613_s16 = smov 0   ;;  %s615_s17 = smov 0  }
   0x5 LB: > { %s473_s2 = sadd.s32 4294967295, %s583_s17   ;;  %s474_s18 = sadd.s32 4294967294, %s583_s17   ;;  %s583_s17 = sphi %s615_s17, %s801_s17   ;;  %s579_s16 = sphi %s613_s16, %s800_s16   ;;  %s575_s15 = sphi %s611_s15, %s799_s15   ;;  %s571_s14 = sphi %s609_s14, %s798_s14  }
   0x6   : > { %s632_s19 = sadd.s32 1, %s583_s17   ;;  %s92_s20 = sadd.s32 1, %s579_s16 }
   0x7   : > { %s89_s21 = ssub.s32 %s583_s17, %s632_s19  ;;  %p102_p0 = scmp.ne.s32.totalorder %s579_s16, %s575_s15 }
   0x8   : > { %p90_p1 = scmp.eq.s32.totalorder %s89_s21, 0  ;;  %p103_p2 = scmp.eq.s32.totalorder %s473_s2, 1 }
   0x9   : > { %p108_p3 = scmp.ne.s32.totalorder %s575_s15, %s571_s14  ;;  %p109_p4 = scmp.eq.s32.totalorder %s474_s18, 1 }
   0xa   : > { %s642_s22 = scalar_select %p90_p1, %s579_s16, %s92_s20  }
   0xb   : > { %p644_p5 = por %p103_p2, %p102_p0  ;;  %p648_p6 = por %p109_p4, %p108_p3 }
   0xc   : > { %p477_p7 = scmp.ge.s32.totalorder %s583_s17, 1  ;;  %p142_p8 = scmp.lt.s32.totalorder %s583_s17, 3 }
   0xe   : > { %p143_p9 = pnand %p477_p7, %p142_p8 }
   0xf   : > { %s654_s25 = sshll.u32 (!%p143_p9), %s473_s2, 4  ;;  %s188_s6 = sld [smem:[#allocation2]] (!%p143_p9) }
  0x10   : > { %146 = sbr.rel (%p143_p9) target bundleno = 214 (0xd6), region = 32  ;;  %p166_p10 = scmp.lt.s32.totalorder (!%p143_p9), %s654_s25, 31 }
  0x11   : > { %s163_s7 = sand.u32 (!%p143_p9), 1, %s575_s15   ;;  %s757_s12 = scalar_lea.hbm (!%p143_p9), %s795_s3, %s654_s25 }
  0x12   : > { %s164_s8 = scalar_lea.vmem (!%p143_p9), [#allocation3], %s163_s7  ;;  %s407_s13 = scalar_lea.sflag (!%p143_p9), [#allocation4], %s163_s7 }
  0x13   : > { %s419_s9 = sshll.u32 (!%p143_p9), %s164_s8, 4  ;;  %s585_s18 = smov (!%p143_p9), [#allocation3]   ;;  %s420_s9 = int_to_ptr.vmem [resolvable:$true] %s419_s9 }
  0x14   : > { %s523_s2 = scalar_lea.vmem (!%p143_p9), %s420_s9, 16  ;;  %s527_s20 = sshll.u32 (!%p143_p9), %s585_s18, 4  ;;  %s528_s20 = int_to_ptr.vmem [resolvable:$false] %s527_s20 }
  0x15   : > { %s167_s26 = scalar_select %p166_p10, %s654_s25, 31  ;;  %v480_v0 = vld [vmem:[%s793_s1] ss:$0 sm:$0xff]  ;;  %vm211_vm0 = vcmask 261120   ;;  %v293_v49 = vlaneseq  ;;  %v704_v54 = vstv %s188_s6  ;;  %vm304_vm1 = vcmask 130112  }
  0x16   : > { %vm311_vm2 = vcmask 195712   ;;  %vm318_vm3 = vcmask 261312   ;;  %vm325_vm4 = vcmask 326912   ;;  %vm332_vm5 = vcmask 392512   ;;  %p524_p11 = scmp.ne.s32.totalorder %s420_s9, %s523_s2  ;;  %s529_s21 = scalar_lea.vmem %s528_s20, 32 }
  0x17   : > { %s479_s27 = sshll.u32 %s167_s26, 3  ;;  %v698_v50 = vand.u32 127, %v293_v49  ;;  %v700_v51 = vshrl.u32 %v293_v49, 7  ;;  %vm339_vm6 = vcmask 458112   ;;  %vm346_vm7 = vcmask 523712   ;;  %p530_p0 = scmp.lt.s32.totalorder %s420_s9, %s528_s20 }
  0x18   : > { %s664_s5 = scalar_lea.vmem %s792_s0, %s479_s27  ;;  %vm353_vm8 = vcmask 589312   ;;  %vm360_vm9 = vcmask 654912   ;;  %vm367_vm10 = vcmask 720512   ;;  %vm374_vm11 = vcmask 786112   ;;  %p525_p12 = pnand %p524_p11, %p644_p5 }
  0x19   : > { %v171_v1 = vld [vmem:[%s664_s5] sm:$0xff]  ;;  %v173_v2 = vld [vmem:[%s664_s5 + $0x10] sm:$0xff]  ;;  %v172_v3 = vld [vmem:[%s664_s5 + $0x8] sm:$0xff]  ;;  %v299_v52 = vadd.s32 4294967288, %v698_v50  ;;  %v313_v53 = vadd.s32 4294967272, %v698_v50  ;;  %v306_v56 = vadd.s32 4294967280, %v698_v50  ;;  %v297_v59 = vsub.s32 %v698_v50, %v700_v51  ;;  %p531_p1 = scmp.lt.s32.totalorder %s529_s21, %s523_s2 }
  0x1a   : > { %v195_v4 = vmul.f32 %v480_v0, %v171_v1  ;;  %v197_v5 = vmul.f32 %v480_v0, %v173_v2  ;;  %v196_v6 = vmul.f32 %v480_v0, %v172_v3  ;;  %v174_v7 = vld [vmem:[%s664_s5 + $0x18] sm:$0xff]  ;;  %v175_v9 = vld [vmem:[%s664_s5 + $0x20] sm:$0xff]  ;;  %v176_v10 = vld [vmem:[%s664_s5 + $0x28] sm:$0xff]  ;;  %v320_v58 = vadd.s32 4294967264, %v698_v50  ;;  %p526_p13 = pneg %p525_p12 }
  0x1b   : > { %v198_v8 = vmul.f32 %v480_v0, %v174_v7  ;;  %v199_v15 = vmul.f32 %v480_v0, %v175_v9  ;;  %v200_v16 = vmul.f32 %v480_v0, %v176_v10  ;;  %v177_v17 = vld [vmem:[%s664_s5 + $0x30] sm:$0xff]  ;;  %v178_v18 = vld [vmem:[%s664_s5 + $0x38] sm:$0xff]  ;;  %v179_v23 = vld [vmem:[%s664_s5 + $0x40] sm:$0xff]  ;;  %v302_v61 = vsub.s32 %v299_v52, %v700_v51  ;;  %p532_p2 = por %p531_p1, %p530_p0 }
  0x1c   : > { %v212_v11 = vsel %vm211_vm0, %v195_v4, 0.0  ;;  %v218_v12 = vsel %vm211_vm0, %v197_v5, 0.0  ;;  %v215_v13 = vsel %vm211_vm0, %v196_v6, 0.0  ;;  %v201_v21 = vmul.f32 %v480_v0, %v177_v17  ;;  %v180_v24 = vld [vmem:[%s664_s5 + $0x48] sm:$0xff]  ;;  %v181_v29 = vld [vmem:[%s664_s5 + $0x50] sm:$0xff]  ;;  %v182_v30 = vld [vmem:[%s664_s5 + $0x58] sm:$0xff] }
  0x1d   : > { %213 = vadd.xlane.f32.xlu0 %v212_v11  ;;  %219 = vadd.xlane.f32.xlu1 %v218_v12  ;;  %v221_v14 = vsel %vm211_vm0, %v198_v8, 0.0  ;;  %v224_v19 = vsel %vm211_vm0, %v199_v15, 0.0  ;;  %v227_v20 = vsel %vm211_vm0, %v200_v16, 0.0  ;;  %v202_v22 = vmul.f32 %v480_v0, %v178_v18  ;;  %v183_v35 = vld [vmem:[%s664_s5 + $0x60] sm:$0xff]  ;;  %v184_v36 = vld [vmem:[%s664_s5 + $0x68] sm:$0xff]  ;;  %v185_v41 = vld [vmem:[%s664_s5 + $0x70] sm:$0xff]  ;;  %p533_p3 = pnand %p532_p2, %p526_p13 }
  0x1e   : > { %v230_v25 = vsel %vm211_vm0, %v201_v21, 0.0  ;;  %v203_v27 = vmul.f32 %v480_v0, %v179_v23  ;;  %v204_v28 = vmul.f32 %v480_v0, %v180_v24  ;;  %v205_v33 = vmul.f32 %v480_v0, %v181_v29  ;;  %v186_v42 = vld [vmem:[%s664_s5 + $0x78] sm:$0xff] }
  0x1f   : > { %v233_v26 = vsel %vm211_vm0, %v202_v22, 0.0  ;;  %v206_v34 = vmul.f32 %v480_v0, %v182_v30  ;;  %v207_v39 = vmul.f32 %v480_v0, %v183_v35  ;;  %v208_v40 = vmul.f32 %v480_v0, %v184_v36 }
  0x20   : > { %v236_v31 = vsel %vm211_vm0, %v203_v27, 0.0  ;;  %v239_v32 = vsel %vm211_vm0, %v204_v28, 0.0  ;;  %v242_v37 = vsel %vm211_vm0, %v205_v33, 0.0  ;;  %v209_v45 = vmul.f32 %v480_v0, %v185_v41 }
  0x21   : > { %216 = vadd.xlane.f32.xlu0 %v215_v13  ;;  %222 = vadd.xlane.f32.xlu1 %v221_v14  ;;  %v245_v38 = vsel %vm211_vm0, %v206_v34, 0.0  ;;  %v248_v43 = vsel %vm211_vm0, %v207_v39, 0.0  ;;  %v251_v44 = vsel %vm211_vm0, %v208_v40, 0.0  ;;  %v210_v46 = vmul.f32 %v480_v0, %v186_v42 }
  0x22   : > { %v254_v47 = vsel %vm211_vm0, %v209_v45, 0.0  ;;  %v316_v62 = vsub.s32 %v313_v53, %v700_v51  ;;  %v309_v63 = vsub.s32 %v306_v56, %v700_v51  ;;  %v327_v3 = vadd.s32 4294967256, %v698_v50 }
  0x23   : > { %v257_v48 = vsel %vm211_vm0, %v210_v46, 0.0  ;;  %v323_v6 = vsub.s32 %v320_v58, %v700_v51  ;;  %v334_v10 = vadd.s32 4294967248, %v698_v50  ;;  %v341_v15 = vadd.s32 4294967240, %v698_v50 }
  0x24   : > { %v330_v13 = vsub.s32 %v327_v3, %v700_v51  ;;  %v348_v23 = vadd.s32 4294967232, %v698_v50  ;;  %v355_v28 = vadd.s32 4294967224, %v698_v50  ;;  %v362_v34 = vadd.s32 4294967216, %v698_v50 }
  0x25   : > { %225 = vadd.xlane.f32.xlu0 %v224_v19  ;;  %228 = vadd.xlane.f32.xlu1 %v227_v20  ;;  %v337_v22 = vsub.s32 %v334_v10, %v700_v51  ;;  %v369_v40 = vadd.s32 4294967208, %v698_v50  ;;  %v376_v46 = vadd.s32 4294967200, %v698_v50  ;;  %vm381_vm12 = vcmask 851712  }
  0x26   : > { %v351_v33 = vsub.s32 %v348_v23, %v700_v51  ;;  %v365_v45 = vsub.s32 %v362_v34, %v700_v51  ;;  %vm388_vm13 = vcmask 917312   ;;  %vm395_vm14 = vcmask 982912  }
  0x27   : > { %v372_v52 = vsub.s32 %v369_v40, %v700_v51  ;;  %vm402_vm15 = vcmask 1048512  }
  0x29   : > { %231 = vadd.xlane.f32.xlu0 %v230_v25  ;;  %234 = vadd.xlane.f32.xlu1 %v233_v26  ;;  %v344_v26 = vsub.s32 %v341_v15, %v700_v51 }
  0x2d   : > { %237 = vadd.xlane.f32.xlu0 %v236_v31  ;;  %240 = vadd.xlane.f32.xlu1 %v239_v32 }
  0x31   : > { %243 = vadd.xlane.f32.xlu0 %v242_v37  ;;  %246 = vadd.xlane.f32.xlu1 %v245_v38  ;;  %v358_v38 = vsub.s32 %v355_v28, %v700_v51 }
  0x35   : > { %249 = vadd.xlane.f32.xlu0 %v248_v43  ;;  %252 = vadd.xlane.f32.xlu1 %v251_v44 }
  0x39   : > { %255 = vadd.xlane.f32.xlu0 %v254_v47  ;;  %258 = vadd.xlane.f32.xlu1 %v257_v48 }
  0xa6   : > { %v214_v55 = vpop.xlane.xlu0 %213  ;;  %v220_v57 = vpop.xlane.xlu1 %219 }
  0xa7   : > { %v261_v60 = vadd.f32 %v704_v54, %v214_v55  ;;  %v263_v0 = vadd.f32 %v704_v54, %v220_v57  ;;  %v383_v55 = vadd.s32 4294967192, %v698_v50 }
  0xa9   : > { %v298_v7 = vrot.slane %v261_v60, %v297_v59  ;;  %v310_v11 = vrot.slane %v263_v0, %v309_v63  ;;  %v379_v60 = vsub.s32 %v376_v46, %v700_v51 }
  0xaa   : > { %v217_v1 = vpop.xlane.xlu0 %216  ;;  %v223_v2 = vpop.xlane.xlu1 %222 }
  0xab   : > { %v262_v4 = vadd.f32 %v704_v54, %v217_v1  ;;  %v264_v5 = vadd.f32 %v704_v54, %v223_v2  ;;  %v386_v2 = vsub.s32 %v383_v55, %v700_v51 }
  0xad   : > { %v303_v8 = vrot.slane %v262_v4, %v302_v61  ;;  %v317_v9 = vrot.slane %v264_v5, %v316_v62  ;;  %v390_v61 = vadd.s32 4294967184, %v698_v50  ;;  %v397_v62 = vadd.s32 4294967176, %v698_v50 }
  0xae   : > { %v226_v12 = vpop.xlane.xlu0 %225  ;;  %v229_v14 = vpop.xlane.xlu1 %228 }
  0xaf   : > { %v305_v16 = vsel %vm304_vm1, %v303_v8, %v298_v7  ;;  %v265_v17 = vadd.f32 %v704_v54, %v226_v12  ;;  %v266_v18 = vadd.f32 %v704_v54, %v229_v14  ;;  %v393_v8 = vsub.s32 %v390_v61, %v700_v51 }
  0xb0   : > { %v312_v19 = vsel %vm311_vm2, %v310_v11, %v305_v16 }
  0xb1   : > { %v319_v20 = vsel %vm318_vm3, %v317_v9, %v312_v19  ;;  %v324_v21 = vrot.slane %v265_v17, %v323_v6  ;;  %v331_v24 = vrot.slane %v266_v18, %v330_v13  ;;  %v400_v9 = vsub.s32 %v397_v62, %v700_v51 }
  0xb2   : > { %v232_v25 = vpop.xlane.xlu0 %231  ;;  %v235_v27 = vpop.xlane.xlu1 %234 }
  0xb3   : > { %v326_v29 = vsel %vm325_vm4, %v324_v21, %v319_v20  ;;  %v267_v30 = vadd.f32 %v704_v54, %v232_v25  ;;  %v268_v31 = vadd.f32 %v704_v54, %v235_v27 }
  0xb4   : > { %v333_v35 = vsel %vm332_vm5, %v331_v24, %v326_v29 }
  0xb5   : > { %v338_v32 = vrot.slane %v267_v30, %v337_v22  ;;  %v345_v36 = vrot.slane %v268_v31, %v344_v26 }
  0xb6   : > { %v238_v37 = vpop.xlane.xlu0 %237  ;;  %v241_v39 = vpop.xlane.xlu1 %240 }
  0xb7   : > { %v340_v41 = vsel %vm339_vm6, %v338_v32, %v333_v35  ;;  %v269_v42 = vadd.f32 %v704_v54, %v238_v37  ;;  %v270_v43 = vadd.f32 %v704_v54, %v241_v39 }
  0xb8   : > { %v347_v47 = vsel %vm346_vm7, %v345_v36, %v340_v41 }
  0xb9   : > { %v352_v44 = vrot.slane %v269_v42, %v351_v33  ;;  %v359_v48 = vrot.slane %v270_v43, %v358_v38 }
  0xba   : > { %v244_v49 = vpop.xlane.xlu0 %243  ;;  %v247_v53 = vpop.xlane.xlu1 %246 }
  0xbb   : > { %v354_v56 = vsel %vm353_vm8, %v352_v44, %v347_v47  ;;  %v271_v57 = vadd.f32 %v704_v54, %v244_v49  ;;  %v272_v58 = vadd.f32 %v704_v54, %v247_v53 }
  0xbc   : > { %v361_v63 = vsel %vm360_vm9, %v359_v48, %v354_v56 }
  0xbd   : > { %v366_v59 = vrot.slane %v271_v57, %v365_v45  ;;  %v373_v0 = vrot.slane %v272_v58, %v372_v52 }
  0xbe   : > { %v250_v1 = vpop.xlane.xlu0 %249  ;;  %v253_v3 = vpop.xlane.xlu1 %252 }
  0xbf   : > { %v368_v4 = vsel %vm367_vm10, %v366_v59, %v361_v63  ;;  %v273_v5 = vadd.f32 %v704_v54, %v250_v1  ;;  %v274_v6 = vadd.f32 %v704_v54, %v253_v3 }
  0xc0   : > { %v375_v50 = vsel %vm374_vm11, %v373_v0, %v368_v4 }
  0xc1   : > { %v380_v7 = vrot.slane %v273_v5, %v379_v60  ;;  %v387_v10 = vrot.slane %v274_v6, %v386_v2 }
  0xc2   : > { %v256_v11 = vpop.xlane.xlu0 %255  ;;  %v259_v12 = vpop.xlane.xlu1 %258 }
  0xc3   : > { %v382_v13 = vsel %vm381_vm12, %v380_v7, %v375_v50  ;;  %v275_v14 = vadd.f32 %v704_v54, %v256_v11  ;;  %v276_v15 = vadd.f32 %v704_v54, %v259_v12 }
  0xc4   : > { %v389_v18 = vsel %vm388_vm13, %v387_v10, %v382_v13 }
  0xc5   : > { %v394_v16 = vrot.slane %v275_v14, %v393_v8  ;;  %v401_v17 = vrot.slane %v276_v15, %v400_v9 }
  0xc7   : > { %v396_v51 = vsel %vm395_vm14, %v394_v16, %v389_v18 }
  0xc8   : > { %v403_v19 = vsel %vm402_vm15, %v401_v17, %v396_v51 }
  0xc9   : > { %405 = vst [vmem:[%s164_s8] sm:$0x1] %v403_v19 }
  0xca   : > { %536 = shalt.err (!%p533_p3)
}
  0xcb   : > { %s537_s25 = scalar_lea.hbm %s757_s12, 16  ;;  %s541_s28 = scalar_lea.hbm %s795_s3, 32 }
  0xcc   : > { %p538_p4 = scmp.ne.s32.totalorder %s757_s12, %s537_s25  ;;  %p542_p9 = scmp.lt.s32.totalorder %s757_s12, %s795_s3 }
  0xcd   : > { %p543_p10 = scmp.lt.s32.totalorder %s541_s28, %s537_s25 }
  0xce   : > { %p539_p7 = pnand %p538_p4, %p644_p5 }
  0xcf   : > { %p544_p11 = por %p543_p10, %p542_p9 }
  0xd0   : > { %p540_p8 = pneg %p539_p7 }
  0xd2   : > { %p545_p12 = pnand %p544_p11, %p540_p8 }
  0xd4   : > { %548 = shalt.err (!%p545_p12)
}
  0xd5   : > { %484 = dma.vmem_to_hbm [thread:$0]  (%p644_p5), %s420_s9, 16, %s757_s12, %s407_s13  }
  0xd6 PF: > { %p490_p13 = scmp.ge.s32.totalorder %s583_s17, 2  ;;  %s431_s4 = sand.u32 1, %s571_s14  }
  0xd7   : > { %s432_s5 = scalar_lea.sflag [#allocation4], %s431_s4 }
  0xd8   : > { %p487_p0 = pnand %p490_p13, %p648_p6 }
  0xda   : > { %p488_p1 = pneg %p487_p0 }
  0xdc   : > { %566 = dma.done.wait (%p488_p1), %s432_s5, 16  }
  0xdd   : > { %568 = vsyncadd (%p488_p1), %s432_s5, 4294967280  ;;  %p14_p2 = scmp.ge.s32.totalorder %s632_s19, 4   ;;  %s798_s14 = smov %s575_s15 }
  0xde   : > { %s799_s15 = smov %s579_s16  ;;  %s800_s16 = smov %s642_s22 }
  0xdf   : > { %s801_s17 = smov %s632_s19  ;;  %16 = sbr.rel (!%p14_p2) target bundleno = 5 (0x5), region = 67 }
  0xe4   :  { %436 = vsyncpa [#allocation4], 1 }
  0xe5   :  { %438 = vsyncpa [#allocation4 + $0x1], 1 }

</bundles_post_ra>
